<compile_context>
chip_gen: v6e
topology: v6e:2x2x1
jax: 0.10.0
libtpu: 0.0.40
codegen_flags: <defaults>
</compile_context>

<pallas_src>
import functools

import numpy as np
import jax
import jax.numpy as jnp
from jax.experimental import pallas as pl
from jax.experimental.pallas import tpu as pltpu


# --------------------------------------------------------------------------- #
# Kernel
# --------------------------------------------------------------------------- #
def _masked_edge_attn_kernel(m_ref, w_ref, edge_ref, out_ref, *, s_real):
    # m_ref:    (bt, S_pad, D)    activations for this batch tile (B-leading layout)
    # w_ref:    (lt, D)           rows of the 'scalar' projection for this Lmax tile
    # edge_ref: (bt, lt, S_pad)   int8, 1 where an edge exists (0 in padded columns)
    # out_ref:  (bt, lt, S_pad)   scores (padded columns come out exactly 0)
    w = w_ref[...]
    bt, lt, s_pad = out_ref.shape

    # Hoisted lane-validity mask for padded seq columns (no-op when S % 128 == 0).
    valid = None
    if s_real < s_pad:
        lane = jax.lax.broadcasted_iota(jnp.int32, (lt, s_pad), 1)
        valid = lane < s_real

    def body(b, carry):
        m_b = m_ref[b]                                        # (S_pad, D) leading-axis slice
        # scale[l, s] = sum_d W[l, d] * M[b, s, d]  == self.scalar(M)[s, b, l]
        scale = jax.lax.dot_general(
            w, m_b,
            dimension_numbers=(((1,), (1,)), ((), ())),
            preferred_element_type=jnp.float32)               # (lt, S_pad)
        if valid is not None:
            # Padded columns -> effectively -inf: p becomes exactly 0 there and
            # the row max equals the max over the real S columns (as in the ref).
            scale = jnp.where(valid, scale, jnp.float32(-1e30))
        # Softmax normalizer over S is constant along S and cancels against the
        # masked re-normalization, so only the max-subtraction is kept.
        p = jnp.exp(scale - jnp.max(scale, axis=-1, keepdims=True))
        mask_c = edge_ref[b].astype(jnp.float32)              # {1, 0} == mask_copy
        num = p * mask_c
        sum_num = jnp.sum(num, axis=-1, keepdims=True)
        sum_p = jnp.sum(p, axis=-1, keepdims=True)
        # == sum(p * mask) with mask = {1 at edges, 1e-10 elsewhere}
        denom = sum_num + 1e-10 * (sum_p - sum_num)           # strictly positive
        out_ref[b] = (num / denom).astype(out_ref.dtype)      # exact divide
        return carry

    # TODO(synk): on v7x the bt per-batch matmuls could be fused into a single
    # (lt, D) x (D, bt*S_pad) MXU call; not worth it on v5e/v6e (matmul is hidden
    # under the (B, Lmax, S) HBM stream).
    jax.lax.fori_loop(0, bt, body, None, unroll=True)


# --------------------------------------------------------------------------- #
# Wrapper
# --------------------------------------------------------------------------- #
def _largest_divisor(n, limit, multiple_of=1):
    for d in range(min(limit, n), 0, -1):
        if n % d == 0 and d % multiple_of == 0:
            return d
    return None


def masked_edge_attention(M, W, edge_mask, *, bt=None, lt=None,
                          matmul_dtype=jnp.float32, out_dtype=jnp.float32,
                          lt_target=512, vmem_budget_bytes=48 * 1024 * 1024):
    """M:         (seq_len, batch, input_dim) f32
       W:         (max_seq_len, input_dim)    f32  (nn.Linear weight, no bias)
       edge_mask: (batch, max_seq_len, seq_len) int8/bool, 1 where an edge exists
       returns scores: (batch, max_seq_len, seq_len)

    v5e note: pass matmul_dtype=jnp.bfloat16 (and out_dtype=jnp.bfloat16 if the
    consumer tolerates it) to cut HBM bytes on the bandwidth-bound streams.
    v6e note: pass vmem_budget_bytes=100<<20 and lt_target=1024 for bigger tiles.
    """
    seq_len, batch, input_dim = M.shape
    max_seq_len = W.shape[0]

    # Lane-dense output: pad the seq axis up to a multiple of 128.
    s_pad = max(128, ((seq_len + 127) // 128) * 128)

    Mb = jnp.transpose(M, (1, 0, 2)).astype(matmul_dtype)      # (B, S, D) once, in wrapper
    edge_mask = edge_mask.astype(jnp.int8)                     # single 1-byte mask input
    if s_pad != seq_len:
        Mb = jnp.pad(Mb, ((0, 0), (0, s_pad - seq_len), (0, 0)))
        edge_mask = jnp.pad(edge_mask, ((0, 0), (0, 0), (0, s_pad - seq_len)))
    Wb = W.astype(matmul_dtype)

    m_isz = jnp.dtype(matmul_dtype).itemsize
    o_isz = jnp.dtype(out_dtype).itemsize

    def vmem_need(bt_, lt_):
        blocks = 2 * (bt_ * s_pad * input_dim * m_isz          # M   (double-buffered)
                      + lt_ * input_dim * m_isz                # W
                      + bt_ * lt_ * s_pad * 1                  # edge (int8)
                      + bt_ * lt_ * s_pad * o_isz)             # out
        temps = 4 * lt_ * s_pad * 4                            # one b's scale/p/num/iota
        return blocks + temps

    # Batch tile: largest divisor of batch that is <= 8 (never falls back to batch).
    if bt is None:
        bt = _largest_divisor(batch, 8)
    # Lmax tile: prefer multiples of 32 (int8 sublane tile), then 8, else full dim.
    if lt is None:
        lt = (_largest_divisor(max_seq_len, lt_target, 32)
              or _largest_divisor(max_seq_len, lt_target, 8)
              or max_seq_len)
        # Shrink under the explicit VMEM budget (keeps lt a multiple of 8).
        while vmem_need(bt, lt) > vmem_budget_bytes:
            if lt >= 16 and lt % 16 == 0 and max_seq_len % (lt // 2) == 0:
                lt //= 2
            elif bt > 1:
                bt = _largest_divisor(batch, bt - 1)
            else:
                break
    assert batch % bt == 0 and max_seq_len % lt == 0

    vmem_limit = int(min(max(vmem_need(bt, lt) * 3 // 2, 32 * 1024 * 1024),
                         100 * 1024 * 1024))

    kernel = functools.partial(_masked_edge_attn_kernel, s_real=seq_len)

    out = pl.pallas_call(
        kernel,
        out_shape=jax.ShapeDtypeStruct((batch, max_seq_len, s_pad), out_dtype),
        grid_spec=pltpu.PrefetchScalarGridSpec(
            num_scalar_prefetch=0,
            grid=(batch // bt, max_seq_len // lt),             # both independent
            in_specs=[
                pl.BlockSpec((bt, s_pad, input_dim), lambda b, l: (b, 0, 0)),
                pl.BlockSpec((lt, input_dim), lambda b, l: (l, 0)),
                pl.BlockSpec((bt, lt, s_pad), lambda b, l: (b, l, 0)),
            ],
            out_specs=pl.BlockSpec((bt, lt, s_pad), lambda b, l: (b, l, 0)),
        ),
        compiler_params=pltpu.CompilerParams(
            dimension_semantics=("parallel", "parallel"),
            vmem_limit_bytes=vmem_limit,
        ),
    )(Mb, Wb, edge_mask)

    return out[:, :, :seq_len]


# --------------------------------------------------------------------------- #
# Host-side helpers / reference
# --------------------------------------------------------------------------- #
def _build_edge_mask(edge_ind, batch, max_seq_len, seq_len):
    """Host-side replication of the edge_ind_ -> dense scatter in the PyTorch
    forward, collapsed to a single int8 indicator (mask / mask_copy are derived
    in-kernel)."""
    em = np.zeros((batch, max_seq_len, seq_len), np.int8)
    for i, edges in enumerate(edge_ind):
        for (p, q) in edges:
            em[i, p, q] = 1
    return jnp.asarray(em)


def _reference(M, W, edge_mask):
    # pure-JAX reference of the PyTorch forward (attn_type='attn1')
    mask_c = edge_mask.astype(jnp.float32)
    mask = mask_c + 1e-10 * (1.0 - mask_c)
    scale = jnp.einsum("sbi,mi->sbm", M, W)                    # (S, B, Lmax)
    alpha = jax.nn.softmax(scale, axis=0)                      # softmax over seq_len
    alpha = jnp.transpose(alpha, (1, 2, 0))                    # (B, Lmax, S)
    masked = alpha * mask
    sums = jnp.sum(masked, axis=-1, keepdims=True)
    return masked / sums * mask_c


if __name__ == "__main__":
    # small shapes consistent with the module
    seq_len, batch, input_dim, max_seq_len = 8, 2, 32, 16
    lengths = [8, 6]

    key = jax.random.PRNGKey(0)
    k_m, k_w = jax.random.split(key)
    M = jax.random.normal(k_m, (seq_len, batch, input_dim), jnp.float32)
    # deterministic init of self.scalar = nn.Linear(input_dim, max_seq_len, bias=False)
    W = (jax.random.uniform(k_w, (max_seq_len, input_dim), jnp.float32) - 0.5) \
        * (2.0 / np.sqrt(input_dim))

    # deterministic edge list: window-of-2 neighbours within each sequence length
    edge_ind = []
    for b in range(batch):
        L = lengths[b]
        edge_ind.append([(p, q) for p in range(L)
                         for q in range(max(0, p - 2), min(L, p + 3))])

    edge_mask = _build_edge_mask(edge_ind, batch, max_seq_len, seq_len)

    scores = masked_edge_attention(M, W, edge_mask)
    scores = jax.block_until_ready(scores)

    ref = _reference(M, W, edge_mask)
    np.testing.assert_allclose(np.asarray(scores), np.asarray(ref),
                               rtol=1e-5, atol=1e-6)
    print("KERNEL_OK")
</pallas_src>

<mosaic_0001>
module attributes {stable_mosaic.version = 11 : i64} {
  func.func @_masked_edge_attn_kernel(%arg0: i32, %arg1: i32, %arg2: memref<2x128x32xf32, #tpu.memory_space<vmem>>, %arg3: memref<16x32xf32, #tpu.memory_space<vmem>>, %arg4: memref<2x16x128xi8, #tpu.memory_space<vmem>>, %arg5: memref<2x16x128xf32, #tpu.memory_space<vmem>>) attributes {dimension_semantics = [#tpu.dimension_semantics<parallel>, #tpu.dimension_semantics<parallel>], iteration_bounds = array<i64: 1, 1>, scalar_prefetch = 0 : i64, scratch_operands = 0 : i64, tpu.core_type = #tpu.core_type<tc>, window_params = [{transform_indices = @transform_0, window_bounds = array<i64: 2, 128, 32>}, {transform_indices = @transform_1, window_bounds = array<i64: 16, 32>}, {transform_indices = @transform_2, window_bounds = array<i64: 2, 16, 128>}, {transform_indices = @transform_3, window_bounds = array<i64: 2, 16, 128>}]} {
    %c0 = arith.constant 0 : index
    %c0_0 = arith.constant 0 : index
    %0 = vector.load %arg3[%c0, %c0_0] : memref<16x32xf32, #tpu.memory_space<vmem>>, vector<16x32xf32>
    %1 = tpu.iota {dimensions = array<i32: 1>} : vector<16x128xi32>
    %c8_i32 = arith.constant 8 : i32
    %2 = vector.broadcast %c8_i32 : i32 to vector<16x128xi32>
    %3 = arith.cmpi slt, %1, %2 : vector<16x128xi32>
    %c0_i32 = arith.constant 0 : i32
    %4 = arith.index_cast %c0_i32 : i32 to index
    %c0_1 = arith.constant 0 : index
    %c0_2 = arith.constant 0 : index
    %5 = vector.load %arg2[%4, %c0_1, %c0_2] : memref<2x128x32xf32, #tpu.memory_space<vmem>>, vector<1x128x32xf32>
    %6 = vector.shape_cast %5 : vector<1x128x32xf32> to vector<128x32xf32>
    %cst = arith.constant dense<0.000000e+00> : vector<16x128xf32>
    %7 = tpu.matmul %0, %6, %cst {dimension_numbers = #tpu.dot_dimension_numbers<[1], [1], [0], [0], [0, 0, 1, 0], [], []>} : vector<16x32xf32>, vector<128x32xf32>, vector<16x128xf32> -> vector<16x128xf32>
    %cst_3 = arith.constant -1.000000e+30 : f32
    %8 = vector.broadcast %cst_3 : f32 to vector<16x128xf32>
    %9 = arith.select %3, %7, %8 : vector<16x128xi1>, vector<16x128xf32>
    %cst_4 = arith.constant dense<0xFF800000> : vector<16xf32>
    %10 = vector.multi_reduction <maximumf>, %9, %cst_4 [1] : vector<16x128xf32> to vector<16xf32>
    %11 = vector.shape_cast %10 : vector<16xf32> to vector<16x1xf32>
    %12 = vector.broadcast %11 : vector<16x1xf32> to vector<16x128xf32>
    %13 = arith.subf %9, %12 : vector<16x128xf32>
    %14 = math.exp %13 : vector<16x128xf32>
    %15 = arith.index_cast %c0_i32 : i32 to index
    %c0_5 = arith.constant 0 : index
    %c0_6 = arith.constant 0 : index
    %16 = vector.load %arg4[%15, %c0_5, %c0_6] : memref<2x16x128xi8, #tpu.memory_space<vmem>>, vector<1x16x128xi8>
    %17 = vector.shape_cast %16 : vector<1x16x128xi8> to vector<16x128xi8>
    %18 = arith.sitofp %17 : vector<16x128xi8> to vector<16x128xf32>
    %19 = arith.mulf %14, %18 : vector<16x128xf32>
    %cst_7 = arith.constant dense<0.000000e+00> : vector<16xf32>
    %20 = vector.multi_reduction <add>, %19, %cst_7 [1] : vector<16x128xf32> to vector<16xf32>
    %21 = vector.shape_cast %20 : vector<16xf32> to vector<16x1xf32>
    %cst_8 = arith.constant dense<0.000000e+00> : vector<16xf32>
    %22 = vector.multi_reduction <add>, %14, %cst_8 [1] : vector<16x128xf32> to vector<16xf32>
    %23 = vector.shape_cast %22 : vector<16xf32> to vector<16x1xf32>
    %24 = arith.subf %23, %21 : vector<16x1xf32>
    %cst_9 = arith.constant 1.000000e-10 : f32
    %25 = vector.broadcast %cst_9 : f32 to vector<16x1xf32>
    %26 = arith.mulf %25, %24 : vector<16x1xf32>
    %27 = arith.addf %21, %26 : vector<16x1xf32>
    %28 = vector.broadcast %27 : vector<16x1xf32> to vector<16x128xf32>
    %29 = arith.divf %19, %28 : vector<16x128xf32>
    %30 = arith.index_cast %c0_i32 : i32 to index
    %c0_10 = arith.constant 0 : index
    %c0_11 = arith.constant 0 : index
    %31 = vector.load %arg5[%30, %c0_10, %c0_11] : memref<2x16x128xf32, #tpu.memory_space<vmem>>, vector<1x16x128xf32>
    %32 = vector.shape_cast %31 : vector<1x16x128xf32> to vector<16x128xf32>
    %33 = vector.shape_cast %29 : vector<16x128xf32> to vector<1x16x128xf32>
    tpu.vector_store %arg5[%30, %c0_10, %c0_11], %33 {strides = array<i32>} : memref<2x16x128xf32, #tpu.memory_space<vmem>>, vector<1x16x128xf32>,
    %c1_i32 = arith.constant 1 : i32
    %34 = arith.index_cast %c1_i32 : i32 to index
    %c0_12 = arith.constant 0 : index
    %c0_13 = arith.constant 0 : index
    %35 = vector.load %arg2[%34, %c0_12, %c0_13] : memref<2x128x32xf32, #tpu.memory_space<vmem>>, vector<1x128x32xf32>
    %36 = vector.shape_cast %35 : vector<1x128x32xf32> to vector<128x32xf32>
    %cst_14 = arith.constant dense<0.000000e+00> : vector<16x128xf32>
    %37 = tpu.matmul %0, %36, %cst_14 {dimension_numbers = #tpu.dot_dimension_numbers<[1], [1], [0], [0], [0, 0, 1, 0], [], []>} : vector<16x32xf32>, vector<128x32xf32>, vector<16x128xf32> -> vector<16x128xf32>
    %cst_15 = arith.constant -1.000000e+30 : f32
    %38 = vector.broadcast %cst_15 : f32 to vector<16x128xf32>
    %39 = arith.select %3, %37, %38 : vector<16x128xi1>, vector<16x128xf32>
    %cst_16 = arith.constant dense<0xFF800000> : vector<16xf32>
    %40 = vector.multi_reduction <maximumf>, %39, %cst_16 [1] : vector<16x128xf32> to vector<16xf32>
    %41 = vector.shape_cast %40 : vector<16xf32> to vector<16x1xf32>
    %42 = vector.broadcast %41 : vector<16x1xf32> to vector<16x128xf32>
    %43 = arith.subf %39, %42 : vector<16x128xf32>
    %44 = math.exp %43 : vector<16x128xf32>
    %45 = arith.index_cast %c1_i32 : i32 to index
    %c0_17 = arith.constant 0 : index
    %c0_18 = arith.constant 0 : index
    %46 = vector.load %arg4[%45, %c0_17, %c0_18] : memref<2x16x128xi8, #tpu.memory_space<vmem>>, vector<1x16x128xi8>
    %47 = vector.shape_cast %46 : vector<1x16x128xi8> to vector<16x128xi8>
    %48 = arith.sitofp %47 : vector<16x128xi8> to vector<16x128xf32>
    %49 = arith.mulf %44, %48 : vector<16x128xf32>
    %cst_19 = arith.constant dense<0.000000e+00> : vector<16xf32>
    %50 = vector.multi_reduction <add>, %49, %cst_19 [1] : vector<16x128xf32> to vector<16xf32>
    %51 = vector.shape_cast %50 : vector<16xf32> to vector<16x1xf32>
    %cst_20 = arith.constant dense<0.000000e+00> : vector<16xf32>
    %52 = vector.multi_reduction <add>, %44, %cst_20 [1] : vector<16x128xf32> to vector<16xf32>
    %53 = vector.shape_cast %52 : vector<16xf32> to vector<16x1xf32>
    %54 = arith.subf %53, %51 : vector<16x1xf32>
    %cst_21 = arith.constant 1.000000e-10 : f32
    %55 = vector.broadcast %cst_21 : f32 to vector<16x1xf32>
    %56 = arith.mulf %55, %54 : vector<16x1xf32>
    %57 = arith.addf %51, %56 : vector<16x1xf32>
    %58 = vector.broadcast %57 : vector<16x1xf32> to vector<16x128xf32>
    %59 = arith.divf %49, %58 : vector<16x128xf32>
    %60 = arith.index_cast %c1_i32 : i32 to index
    %c0_22 = arith.constant 0 : index
    %c0_23 = arith.constant 0 : index
    %61 = vector.load %arg5[%60, %c0_22, %c0_23] : memref<2x16x128xf32, #tpu.memory_space<vmem>>, vector<1x16x128xf32>
    %62 = vector.shape_cast %61 : vector<1x16x128xf32> to vector<16x128xf32>
    %63 = vector.shape_cast %59 : vector<16x128xf32> to vector<1x16x128xf32>
    tpu.vector_store %arg5[%60, %c0_22, %c0_23], %63 {strides = array<i32>} : memref<2x16x128xf32, #tpu.memory_space<vmem>>, vector<1x16x128xf32>,
    %c2_i32 = arith.constant 2 : i32
    return
  }
  func.func @transform_0(%arg0: i32, %arg1: i32) -> (i32, i32, i32) {
    %c0_i32 = arith.constant 0 : i32
    %c0_i32_0 = arith.constant 0 : i32
    %c0_i32_1 = arith.constant 0 : i32
    return %arg0, %c0_i32, %c0_i32_0 : i32, i32, i32
  }
  func.func @transform_1(%arg0: i32, %arg1: i32) -> (i32, i32) {
    %c0_i32 = arith.constant 0 : i32
    %c0_i32_0 = arith.constant 0 : i32
    return %arg1, %c0_i32 : i32, i32
  }
  func.func @transform_2(%arg0: i32, %arg1: i32) -> (i32, i32, i32) {
    %c0_i32 = arith.constant 0 : i32
    %c0_i32_0 = arith.constant 0 : i32
    return %arg0, %arg1, %c0_i32 : i32, i32, i32
  }
  func.func @transform_3(%arg0: i32, %arg1: i32) -> (i32, i32, i32) {
    %c0_i32 = arith.constant 0 : i32
    %c0_i32_0 = arith.constant 0 : i32
    return %arg0, %arg1, %c0_i32 : i32, i32, i32
  }
}

</mosaic_0001>

<bundles_post_ra>
// kernel: tpu_custom_call.1
= control target key start
LH: loop header
LB: loop body
LE: loop exit
PB: predicated region body
PF: predicated region fallthrough
CT: control target
= control target key end

     0   :  { %vm36_vm0 = vcmask 261120   ;;  %s813_s0 = inlined_call_operand.vmem [shape: f32[2,128,32], index: 0, kind: input, shape index: {}]   ;;  %s814_s1 = inlined_call_operand.vmem [shape: f32[16,32], index: 1, kind: input, shape index: {}]   ;;  %s815_s2 = inlined_call_operand.vmem [shape: s8[2,16,128], index: 2, kind: input, shape index: {}]   ;;  %s816_s3 = inlined_call_operand.hbm [shape: f32[2,16,128], index: 3, kind: output, shape index: {}]  }
   0x1   :  { %v35_v0 = vld [vmem:[%s813_s0 + $0x78] sm:$0xff]  ;;  %v34_v2 = vld [vmem:[%s813_s0 + $0x70] sm:$0xff]  ;;  %v33_v4 = vld [vmem:[%s813_s0 + $0x68] sm:$0xff] }
   0x2   :  { %v437_v1 = vld [vmem:[%s813_s0 + $0xf8] sm:$0xff]  ;;  %502 = vmatprep.subr.msk.mxu0 %vm36_vm0, %v35_v0  ;;  %v436_v3 = vld [vmem:[%s813_s0 + $0xf0] sm:$0xff]  ;;  %v435_v5 = vld [vmem:[%s813_s0 + $0xe8] sm:$0xff] }
   0x3   :  { %537 = vmatprep.subr.msk.mxu1 %vm36_vm0, %v437_v1  ;;  %503 = vmatpush3.xpose.msk.msra.mxu0 %vm36_vm0, %v35_v0  ;;  %v32_v6 = vld [vmem:[%s813_s0 + $0x60] sm:$0xff] }
   0x4   :  { %538 = vmatpush3.xpose.msk.msra.mxu1 %vm36_vm0, %v437_v1  ;;  %504 = vmatprep.subr.msk.mxu0 %vm36_vm0, %v34_v2  ;;  %v434_v7 = vld [vmem:[%s813_s0 + $0xe0] sm:$0xff] }
   0x5   :  { %539 = vmatprep.subr.msk.mxu1 %vm36_vm0, %v436_v3  ;;  %v15_v8 = vld [vmem:[%s814_s1] sm:$0xff] }
   0x7   :  { %505 = vmatpush3.xpose.msk.msra.mxu0 %vm36_vm0, %v34_v2 }
   0x8   :  { %540 = vmatpush3.xpose.msk.msra.mxu1 %vm36_vm0, %v436_v3  ;;  %506 = vmatprep.subr.msk.mxu0 %vm36_vm0, %v33_v4 }
   0x9   :  { %541 = vmatprep.subr.msk.mxu1 %vm36_vm0, %v435_v5 }
   0xb   :  { %507 = vmatpush3.xpose.msk.msra.mxu0 %vm36_vm0, %v33_v4 }
   0xc   :  { %542 = vmatpush3.xpose.msk.msra.mxu1 %vm36_vm0, %v435_v5  ;;  %508 = vmatprep.subr.msk.mxu0 %vm36_vm0, %v32_v6 }
   0xd   :  { %543 = vmatprep.subr.msk.mxu1 %vm36_vm0, %v434_v7 }
   0xe   :  { %8 = vsyncpa [#allocation3], 0  ;;  %v31_v9 = vld [vmem:[%s813_s0 + $0x58] sm:$0xff]  ;;  %534 = vmatprep.mubr.msk.f32.mxu0 %vm36_vm0, %v15_v8  ;;  %569 = vmatprep.mubr.msk.f32.mxu1 %vm36_vm0, %v15_v8  ;;  %v30_v11 = vld [vmem:[%s813_s0 + $0x50] sm:$0xff]  ;;  %v17_v34 = vlaneseq }
   0xf   :  { %v433_v10 = vld [vmem:[%s813_s0 + $0xd8] sm:$0xff]  ;;  %509 = vmatpush3.xpose.msk.msra.mxu0 %vm36_vm0, %v32_v6  ;;  %v432_v12 = vld [vmem:[%s813_s0 + $0xd0] sm:$0xff]  ;;  %v29_v13 = vld [vmem:[%s813_s0 + $0x48] sm:$0xff] }
  0x10   :  { %544 = vmatpush3.xpose.msk.msra.mxu1 %vm36_vm0, %v434_v7  ;;  %510 = vmatprep.subr.msk.mxu0 %vm36_vm0, %v31_v9  ;;  %v431_v14 = vld [vmem:[%s813_s0 + $0xc8] sm:$0xff]  ;;  %v28_v15 = vld [vmem:[%s813_s0 + $0x40] sm:$0xff]  ;;  %v27_v17 = vld [vmem:[%s813_s0 + $0x38] sm:$0xff]  ;;  %v18_v35 = vand.u32 127, %v17_v34 }
  0x11   :  { %545 = vmatprep.subr.msk.mxu1 %vm36_vm0, %v433_v10  ;;  %v430_v16 = vld [vmem:[%s813_s0 + $0xc0] sm:$0xff]  ;;  %v429_v18 = vld [vmem:[%s813_s0 + $0xb8] sm:$0xff]  ;;  %v26_v19 = vld [vmem:[%s813_s0 + $0x30] sm:$0xff] }
  0x12   :  { %v428_v20 = vld [vmem:[%s813_s0 + $0xb0] sm:$0xff]  ;;  %v25_v21 = vld [vmem:[%s813_s0 + $0x28] sm:$0xff]  ;;  %v24_v23 = vld [vmem:[%s813_s0 + $0x20] sm:$0xff]  ;;  %vm19_vm1 = vcmp.lt.s32.totalorder %v18_v35, 8 }
  0x13   :  { %511 = vmatpush3.xpose.msk.msra.mxu0 %vm36_vm0, %v31_v9  ;;  %v427_v22 = vld [vmem:[%s813_s0 + $0xa8] sm:$0xff]  ;;  %v426_v24 = vld [vmem:[%s813_s0 + $0xa0] sm:$0xff]  ;;  %v23_v25 = vld [vmem:[%s813_s0 + $0x18] sm:$0xff] }
  0x14   :  { %546 = vmatpush3.xpose.msk.msra.mxu1 %vm36_vm0, %v433_v10  ;;  %512 = vmatprep.subr.msk.mxu0 %vm36_vm0, %v30_v11  ;;  %v425_v26 = vld [vmem:[%s813_s0 + $0x98] sm:$0xff]  ;;  %v22_v27 = vld [vmem:[%s813_s0 + $0x10] sm:$0xff]  ;;  %v21_v29 = vld [vmem:[%s813_s0 + $0x8] sm:$0xff] }
  0x15   :  { %547 = vmatprep.subr.msk.mxu1 %vm36_vm0, %v432_v12  ;;  %v424_v28 = vld [vmem:[%s813_s0 + $0x90] sm:$0xff]  ;;  %v423_v30 = vld [vmem:[%s813_s0 + $0x88] sm:$0xff]  ;;  %v20_v31 = vld [vmem:[%s813_s0] sm:$0xff] }
  0x16   :  { %v422_v32 = vld [vmem:[%s813_s0 + $0x80] sm:$0xff]  ;;  %v16_v33 = vld [vmem:[%s814_s1 + $0x8] sm:$0xff] }
  0x17   :  { %513 = vmatpush3.xpose.msk.msra.mxu0 %vm36_vm0, %v30_v11  ;;  %v459_v56 = vld [vmem:[%s815_s2] sm:$0xff]   ;;  %s614_s2 = smov [#allocation2]  }
  0x18   :  { %548 = vmatpush3.xpose.msk.msra.mxu1 %vm36_vm0, %v432_v12  ;;  %514 = vmatprep.subr.msk.mxu0 %vm36_vm0, %v29_v13  ;;  %v460_v57 = vunpack.c.0.s8 %v459_v56  ;;  %v464_v59 = vunpack.c.2.s8 %v459_v56  ;;  %v461_v60 = vunpack.c.1.s8 %v459_v56  ;;  %v465_v2 = vunpack.c.3.s8 %v459_v56  ;;  %s393_s26 = sshll.u32 %s614_s2, 4  ;;  %s394_s26 = int_to_ptr.vmem [resolvable:$true] %s393_s26 }
  0x19   :  { %549 = vmatprep.subr.msk.mxu1 %vm36_vm0, %v431_v14  ;;  %s592_s27 = scalar_lea.vmem %s394_s26, 512  ;;  %p597_p1 = scmp.lt.s32.totalorder %s394_s26, %s394_s26 }
  0x1a   :  { %v182_v58 = vcvt.s32.f32 %v460_v57  ;;  %v363_v0 = vcvt.s32.f32 %v464_v59  ;;  %v183_v1 = vcvt.s32.f32 %v461_v60  ;;  %v364_v6 = vcvt.s32.f32 %v465_v2  ;;  %p593_p0 = scmp.ne.s32.totalorder %s394_s26, %s592_s27  ;;  %p598_p2 = scmp.lt.s32.totalorder %s592_s27, %s592_s27 }
  0x1b   :  { %515 = vmatpush3.xpose.msk.msra.mxu0 %vm36_vm0, %v29_v13 }
  0x1c   :  { %550 = vmatpush3.xpose.msk.msra.mxu1 %vm36_vm0, %v431_v14  ;;  %516 = vmatprep.subr.msk.mxu0 %vm36_vm0, %v28_v15  ;;  %p599_p3 = por %p598_p2, %p597_p1 }
  0x1d   :  { %551 = vmatprep.subr.msk.mxu1 %vm36_vm0, %v430_v16 }
  0x1e   :  { %p600_p4 = pnand %p599_p3, %p593_p0 }
  0x1f   :  { %517 = vmatpush3.xpose.msk.msra.mxu0 %vm36_vm0, %v28_v15 }
  0x20   :  { %552 = vmatpush3.xpose.msk.msra.mxu1 %vm36_vm0, %v430_v16  ;;  %518 = vmatprep.subr.msk.mxu0 %vm36_vm0, %v27_v17 }
  0x21   :  { %553 = vmatprep.subr.msk.mxu1 %vm36_vm0, %v429_v18 }
  0x23   :  { %519 = vmatpush3.xpose.msk.msra.mxu0 %vm36_vm0, %v27_v17 }
  0x24   :  { %554 = vmatpush3.xpose.msk.msra.mxu1 %vm36_vm0, %v429_v18  ;;  %520 = vmatprep.subr.msk.mxu0 %vm36_vm0, %v26_v19 }
  0x25   :  { %555 = vmatprep.subr.msk.mxu1 %vm36_vm0, %v428_v20 }
  0x27   :  { %521 = vmatpush3.xpose.msk.msra.mxu0 %vm36_vm0, %v26_v19 }
  0x28   :  { %556 = vmatpush3.xpose.msk.msra.mxu1 %vm36_vm0, %v428_v20  ;;  %522 = vmatprep.subr.msk.mxu0 %vm36_vm0, %v25_v21 }
  0x29   :  { %557 = vmatprep.subr.msk.mxu1 %vm36_vm0, %v427_v22 }
  0x2b   :  { %523 = vmatpush3.xpose.msk.msra.mxu0 %vm36_vm0, %v25_v21 }
  0x2c   :  { %558 = vmatpush3.xpose.msk.msra.mxu1 %vm36_vm0, %v427_v22  ;;  %524 = vmatprep.subr.msk.mxu0 %vm36_vm0, %v24_v23 }
  0x2d   :  { %559 = vmatprep.subr.msk.mxu1 %vm36_vm0, %v426_v24 }
  0x2f   :  { %525 = vmatpush3.xpose.msk.msra.mxu0 %vm36_vm0, %v24_v23 }
  0x30   :  { %560 = vmatpush3.xpose.msk.msra.mxu1 %vm36_vm0, %v426_v24  ;;  %526 = vmatprep.subr.msk.mxu0 %vm36_vm0, %v23_v25 }
  0x31   :  { %561 = vmatprep.subr.msk.mxu1 %vm36_vm0, %v425_v26 }
  0x33   :  { %527 = vmatpush3.xpose.msk.msra.mxu0 %vm36_vm0, %v23_v25 }
  0x34   :  { %562 = vmatpush3.xpose.msk.msra.mxu1 %vm36_vm0, %v425_v26  ;;  %528 = vmatprep.subr.msk.mxu0 %vm36_vm0, %v22_v27 }
  0x35   :  { %563 = vmatprep.subr.msk.mxu1 %vm36_vm0, %v424_v28 }
  0x37   :  { %529 = vmatpush3.xpose.msk.msra.mxu0 %vm36_vm0, %v22_v27 }
  0x38   :  { %564 = vmatpush3.xpose.msk.msra.mxu1 %vm36_vm0, %v424_v28  ;;  %530 = vmatprep.subr.msk.mxu0 %vm36_vm0, %v21_v29 }
  0x39   :  { %565 = vmatprep.subr.msk.mxu1 %vm36_vm0, %v423_v30 }
  0x3b   :  { %531 = vmatpush3.xpose.msk.msra.mxu0 %vm36_vm0, %v21_v29 }
  0x3c   :  { %566 = vmatpush3.xpose.msk.msra.mxu1 %vm36_vm0, %v423_v30  ;;  %532 = vmatprep.subr.msk.mxu0 %vm36_vm0, %v20_v31 }
  0x3d   :  { %567 = vmatprep.subr.msk.mxu1 %vm36_vm0, %v422_v32 }
  0x3f   :  { %533 = vmatpush3.xpose.msk.msra.mxu0 %vm36_vm0, %v20_v31 }
  0x40   :  { %568 = vmatpush3.xpose.msk.msra.mxu1 %vm36_vm0, %v422_v32 }
  0x42   :  { %535 = vmatmul.mubr.msk.f32.vlgmr.msra.gmra.mxu0 %vm36_vm0, %v16_v33 }
  0x43   :  { %570 = vmatmul.mubr.msk.f32.vlgmr.msra.gmra.mxu1 %vm36_vm0, %v16_v33 }
 0x102   :  { %v536_v36 = vpop.f32.mrf.mxu0 }
 0x103   :  { %v571_v37 = vpop.f32.mrf.mxu1  ;;  %v167_v43 = vsel %vm19_vm1, %v536_v36, -1e+30 }
 0x104   :  { %v157_v38 = vpop.f32.mrf.mxu0  ;;  %v347_v42 = vsel %vm19_vm1, %v571_v37, -1e+30 }
 0x105   :  { %v337_v39 = vpop.f32.mrf.mxu1  ;;  %v166_v41 = vsel %vm19_vm1, %v157_v38, -1e+30 }
 0x106   :  { %v346_v40 = vsel %vm19_vm1, %v337_v39, -1e+30  ;;  %168 = vmax.xlane.f32.xlu0 %v166_v41 }
 0x107   :  { %348 = vmax.xlane.f32.xlu1 %v346_v40 }
 0x10a   :  { %170 = vmax.xlane.f32.xlu0 %v167_v43 }
 0x10b   :  { %350 = vmax.xlane.f32.xlu1 %v347_v42 }
 0x18f   :  { %v169_v45 = vpop.xlane.xlu0 %168 }
 0x190   :  { %v349_v44 = vpop.xlane.xlu1 %348  ;;  %v172_v47 = vsub.f32 %v166_v41, %v169_v45 }
 0x191   :  { %v352_v46 = vsub.f32 %v346_v40, %v349_v44 }
 0x192   :  { %v174_v48 = vmul.f32 1.442695, %v172_v47 }
 0x193   :  { %v171_v50 = vpop.xlane.xlu0 %170  ;;  %v354_v51 = vmul.f32 1.442695, %v352_v46 }
 0x194   :  { %v351_v49 = vpop.xlane.xlu1 %350  ;;  %v173_v52 = vsub.f32 %v167_v43, %v171_v50  ;;  %576 = vpow2.f32 %v174_v48 }
 0x195   :  { %v353_v53 = vsub.f32 %v347_v42, %v351_v49  ;;  %578 = vpow2.f32 %v354_v51 }
 0x196   :  { %v176_v54 = vmul.f32 1.442695, %v173_v52 }
 0x197   :  { %v356_v55 = vmul.f32 1.442695, %v353_v53 }
 0x198   :  { %580 = vpow2.f32 %v176_v54 }
 0x199   :  { %582 = vpow2.f32 %v356_v55 }
 0x1a1   :  { %v577_v61 = vpop.eup %576 }
 0x1a2   :  { %190 = vadd.xlane.f32.xlu0 %v577_v61  ;;  %v579_v62 = vpop.eup %578  ;;  %v184_v63 = vmul.f32 %v577_v61, %v182_v58 }
 0x1a3   :  { %v365_v4 = vmul.f32 %v579_v62, %v363_v0 }
 0x1a5   :  { %v581_v3 = vpop.eup %580 }
 0x1a6   :  { %186 = vadd.xlane.f32.xlu0 %v184_v63  ;;  %192 = vadd.xlane.f32.xlu1 %v581_v3  ;;  %v185_v5 = vmul.f32 %v581_v3, %v183_v1  ;;  %v583_v7 = vpop.eup %582 }
 0x1a7   :  { %v366_v8 = vmul.f32 %v583_v7, %v364_v6 }
 0x1aa   :  { %367 = vadd.xlane.f32.xlu0 %v365_v4  ;;  %188 = vadd.xlane.f32.xlu1 %v185_v5 }
 0x1ae   :  { %371 = vadd.xlane.f32.xlu0 %v579_v62  ;;  %369 = vadd.xlane.f32.xlu1 %v366_v8 }
 0x1b2   :  { %373 = vadd.xlane.f32.xlu1 %v583_v7 }
 0x22b   :  { %v191_v9 = vpop.xlane.xlu0 %190 }
 0x22f   :  { %v193_v10 = vpop.xlane.xlu1 %192  ;;  %v187_v11 = vpop.xlane.xlu0 %186 }
 0x230   :  { %v194_v12 = vsub.f32 %v191_v9, %v187_v11 }
 0x232   :  { %v196_v13 = vmul.f32 1e-10, %v194_v12 }
 0x233   :  { %v189_v14 = vpop.xlane.xlu1 %188  ;;  %v368_v15 = vpop.xlane.xlu0 %367 }
 0x234   :  { %v198_v16 = vadd.f32 %v196_v13, %v187_v11  ;;  %v195_v17 = vsub.f32 %v193_v10, %v189_v14 }
 0x236   :  { %584 = vrcp.f32 %v198_v16  ;;  %v197_v18 = vmul.f32 1e-10, %v195_v17 }
 0x237   :  { %v370_v19 = vpop.xlane.xlu1 %369  ;;  %v372_v20 = vpop.xlane.xlu0 %371 }
 0x238   :  { %v199_v21 = vadd.f32 %v197_v18, %v189_v14  ;;  %v375_v22 = vsub.f32 %v372_v20, %v368_v15 }
 0x23a   :  { %586 = vrcp.f32 %v199_v21  ;;  %v377_v23 = vmul.f32 1e-10, %v375_v22 }
 0x23b   :  { %v374_v24 = vpop.xlane.xlu1 %373 }
 0x23c   :  { %v379_v25 = vadd.f32 %v377_v23, %v368_v15  ;;  %v376_v26 = vsub.f32 %v374_v24, %v370_v19 }
 0x23e   :  { %588 = vrcp.f32 %v379_v25  ;;  %v378_v27 = vmul.f32 1e-10, %v376_v26 }
 0x240   :  { %v380_v28 = vadd.f32 %v378_v27, %v370_v19 }
 0x242   :  { %590 = vrcp.f32 %v380_v28 }
 0x243   :  { %v585_v29 = vpop.eup %584 }
 0x244   :  { %v201_v30 = vmul.f32 %v585_v29, %v184_v63 }
 0x246   :  { %204 = vst [vmem:[#allocation2] sm:$0xff] %v201_v30 }
 0x247   :  { %v587_v31 = vpop.eup %586 }
 0x248   :  { %v203_v32 = vmul.f32 %v587_v31, %v185_v5 }
 0x24a   :  { %205 = vst [vmem:[#allocation2 + $0x8] sm:$0xff] %v203_v32 }
 0x24b   :  { %v589_v33 = vpop.eup %588 }
 0x24c   :  { %v382_v34 = vmul.f32 %v589_v33, %v365_v4 }
 0x24e   :  { %386 = vst [vmem:[#allocation2 + $0x10] sm:$0xff] %v382_v34 }
 0x24f   :  { %v591_v35 = vpop.eup %590 }
 0x250   :  { %v384_v36 = vmul.f32 %v591_v35, %v366_v8 }
 0x252   :  { %387 = vst [vmem:[#allocation2 + $0x18] sm:$0xff] %v384_v36 }
 0x253   :  { %603 = shalt.err (!%p600_p4)
}
 0x254   :  { %s615_s28 = smov 128   ;;  %s616_s29 = smov 8  }
 0x255   :  { %399 = dma.vmem_to_hbm [thread:$0]  %s394_s26, 512, %s816_s3, [#allocation3], %s615_s28, %s615_s28, %s616_s29  }
 0x256   :  { %612 = dma.done.wait [#allocation3], 512  }
 0x257   :  { %613 = vsyncadd [#allocation3], 4294966784 }
 0x258   :  { %403 = vsyncpa [#allocation3], 1 }

</bundles_post_ra>
